<compile_context>
chip_gen: v5e
topology: v5e:2x2
jax: 0.10.0
libtpu: 0.0.40
codegen_flags: <defaults>
</compile_context>

<pallas_src>
import jax
import jax.numpy as jnp
from jax.experimental import pallas as pl
from jax.experimental.pallas import tpu as pltpu


def diffusion_kernel(x0_ref, eps_ref, sab_ref, s1m_ref,
                     w1_ref, bias1_ref, w2_ref, b2_ref, pred_ref):
    b = pl.program_id(0)
    sab = sab_ref[b]                       # SMEM scalar: sqrt(alpha_bar_t[b])
    s1m = s1m_ref[b]                       # SMEM scalar: sqrt(1 - alpha_bar_t[b])

    # ---- forward noising: bf16 DMA, f32 math (lane-dense (C_pad, HW) tile) ----
    xt = sab * x0_ref[...].astype(jnp.float32) + s1m * eps_ref[...].astype(jnp.float32)

    # ---- time-conditioned pointwise (1x1 conv) epsilon predictor, all f32 ----
    h = jnp.dot(w1_ref[...], xt, preferred_element_type=jnp.float32)   # (hidden, HW)
    h = jnp.maximum(h + bias1_ref[...], 0.0)                           # (hidden,1) lane-bcast
    p = jnp.dot(w2_ref[...], h, preferred_element_type=jnp.float32)    # (C_pad, HW)
    pred_ref[...] = p + b2_ref[...]                                    # (C_pad,1) lane-bcast


def diffusion_forward(x0, key, alpha, params):
    """Equivalent of DiffusionModel.forward: returns (pred, epsilon_0)."""
    B, C, H, W = x0.shape
    HW = H * W
    T = alpha.shape[0] - 1
    alpha_bar = jnp.cumprod(alpha, axis=0)

    key_t, key_eps = jax.random.split(key)
    # torch.randint(2, T, (B,1)).squeeze()  (upper bound exclusive)
    t = jax.random.randint(key_t, (B,), 2, T)
    epsilon_0 = jax.random.normal(key_eps, x0.shape, dtype=x0.dtype)

    ab_t = alpha_bar[t]                                    # (B,)
    sab = jnp.sqrt(ab_t).astype(jnp.float32)               # (B,)
    s1m = jnp.sqrt(1.0 - ab_t).astype(jnp.float32)         # (B,)

    w1, b1, w2, b2, temb_table = params
    hidden = w1.shape[0]

    C_pad = max(8, ((C + 7) // 8) * 8)                     # full-sublane channels
    pad_c = C_pad - C

    # native (B, C_pad, HW) layout, bf16 for the two big read streams
    def prep(a):
        a = a.reshape(B, C, HW)
        a = jnp.pad(a, ((0, 0), (0, pad_c), (0, 0)))
        return a.astype(jnp.bfloat16)

    x0b = prep(x0)
    epsb = prep(epsilon_0)

    # weights stay f32 (memory-bound kernel, MXU work is negligible)
    w1p = jnp.pad(w1, ((0, 0), (0, pad_c))).astype(jnp.float32)        # (hidden, C_pad)
    w2p = jnp.pad(w2, ((0, pad_c), (0, 0))).astype(jnp.float32)        # (C_pad, hidden)
    b2c = jnp.pad(b2, (0, pad_c)).reshape(C_pad, 1).astype(jnp.float32)

    # per-batch time-conditioned bias, O(B*hidden) only (no HW broadcast in HBM)
    bias1 = (b1[None, :] + temb_table[t]).astype(jnp.float32)          # (B, hidden)
    bias1 = bias1[:, :, None]                                          # (B, hidden, 1)

    flops = B * HW * (2 * hidden * C_pad + 2 * C_pad * hidden + 4 * C_pad + 2 * hidden)
    bytes_accessed = (2 * B * C_pad * HW * 2          # x0 + eps bf16 reads
                      + B * C_pad * HW * 4            # pred f32 write
                      + 2 * hidden * C_pad * 4        # w1, w2
                      + B * hidden * 4 + C_pad * 4 + 2 * B * 4)

    pred_pad = pl.pallas_call(
        diffusion_kernel,
        out_shape=jax.ShapeDtypeStruct((B, C_pad, HW), jnp.float32),
        grid=(B,),
        in_specs=[
            pl.BlockSpec((None, C_pad, HW), lambda b: (b, 0, 0)),        # x0 (bf16)
            pl.BlockSpec((None, C_pad, HW), lambda b: (b, 0, 0)),        # eps (bf16)
            pl.BlockSpec(memory_space=pltpu.MemorySpace.SMEM),           # sab (B,)
            pl.BlockSpec(memory_space=pltpu.MemorySpace.SMEM),           # s1m (B,)
            pl.BlockSpec((hidden, C_pad), lambda b: (0, 0)),             # w1
            pl.BlockSpec((None, hidden, 1), lambda b: (b, 0, 0)),        # per-batch bias
            pl.BlockSpec((C_pad, hidden), lambda b: (0, 0)),             # w2
            pl.BlockSpec((C_pad, 1), lambda b: (0, 0)),                  # b2
        ],
        out_specs=pl.BlockSpec((None, C_pad, HW), lambda b: (b, 0, 0)),
        compiler_params=pltpu.CompilerParams(
            dimension_semantics=("parallel",)),                         # v7x megacore
        cost_estimate=pl.CostEstimate(flops=flops, transcendentals=0,
                                      bytes_accessed=bytes_accessed),
    )(x0b, epsb, sab, s1m, w1p, bias1, w2p, b2c)

    pred = pred_pad[:, :C, :].reshape(B, C, H, W)       # no transpose on the way out
    return pred, epsilon_0


def init_params(key, C, hidden, n_timesteps):
    # TODO(synk): the inner `model` is a user-provided nn.Module in the original
    # code; here it is a deterministic synthetic time-conditioned 1x1-conv MLP.
    k1, k2, k3, k4, k5 = jax.random.split(key, 5)
    w1 = 0.1 * jax.random.normal(k1, (hidden, C), dtype=jnp.float32)
    b1 = 0.01 * jax.random.normal(k2, (hidden,), dtype=jnp.float32)
    w2 = 0.1 * jax.random.normal(k3, (C, hidden), dtype=jnp.float32)
    b2 = 0.01 * jax.random.normal(k4, (C,), dtype=jnp.float32)
    temb = 0.1 * jax.random.normal(k5, (n_timesteps, hidden), dtype=jnp.float32)
    return (w1, b1, w2, b2, temb)


def _reference_forward(x0, key, alpha, params):
    """Pure-JAX f32 reference (same RNG stream) for a correctness check."""
    B, C, H, W = x0.shape
    T = alpha.shape[0] - 1
    alpha_bar = jnp.cumprod(alpha, axis=0)
    key_t, key_eps = jax.random.split(key)
    t = jax.random.randint(key_t, (B,), 2, T)
    eps = jax.random.normal(key_eps, x0.shape, dtype=x0.dtype)
    ab_t = alpha_bar[t].reshape(B, 1, 1, 1)
    xt = jnp.sqrt(ab_t) * x0 + jnp.sqrt(1.0 - ab_t) * eps
    w1, b1, w2, b2, temb = params
    xt2 = xt.reshape(B, C, H * W)
    bias = (b1[None, :] + temb[t])[:, :, None]                       # (B, hidden, 1)
    h = jnp.maximum(jnp.einsum('hc,bcn->bhn', w1, xt2) + bias, 0.0)
    p = jnp.einsum('ch,bhn->bcn', w2, h) + b2[None, :, None]
    return p.reshape(B, C, H, W), eps


if __name__ == "__main__":
    B, C, H, W = 2, 4, 16, 16
    hidden = 32
    n_alpha = 10                       # len(alpha); T = 9

    root = jax.random.PRNGKey(0)
    k_x, k_p, k_fwd = jax.random.split(root, 3)

    # DDPM-style schedule: alpha = 1 - beta, alpha_bar = cumprod(alpha)
    alpha = 1.0 - jnp.linspace(1e-4, 2e-2, n_alpha, dtype=jnp.float32)

    x0 = jax.random.normal(k_x, (B, C, H, W), dtype=jnp.float32)
    params = init_params(k_p, C, hidden, n_alpha)

    pred, eps0 = jax.jit(diffusion_forward)(x0, k_fwd, alpha, params)
    jax.block_until_ready((pred, eps0))

    assert pred.shape == (B, C, H, W) and eps0.shape == (B, C, H, W)
    assert pred.dtype == jnp.float32 and eps0.dtype == jnp.float32
    assert bool(jnp.all(jnp.isfinite(pred)))

    # correctness vs pure-JAX f32 reference (tolerance covers bf16 input DMA)
    pred_ref, eps_ref = _reference_forward(x0, k_fwd, alpha, params)
    assert bool(jnp.allclose(eps0, eps_ref))
    assert bool(jnp.allclose(pred, pred_ref, atol=5e-2, rtol=5e-2))

    print("KERNEL_OK")
</pallas_src>

<mosaic_0001>
module attributes {stable_mosaic.version = 11 : i64} {
  func.func @diffusion_kernel(%arg0: i32, %arg1: memref<1x8x256xbf16, #tpu.memory_space<vmem>>, %arg2: memref<1x8x256xbf16, #tpu.memory_space<vmem>>, %arg3: memref<2xf32, #tpu.memory_space<smem>>, %arg4: memref<2xf32, #tpu.memory_space<smem>>, %arg5: memref<32x8xf32, #tpu.memory_space<vmem>>, %arg6: memref<1x32x1xf32, #tpu.memory_space<vmem>>, %arg7: memref<8x32xf32, #tpu.memory_space<vmem>>, %arg8: memref<8x1xf32, #tpu.memory_space<vmem>>, %arg9: memref<1x8x256xf32, #tpu.memory_space<vmem>>) attributes {dimension_semantics = [#tpu.dimension_semantics<parallel>], iteration_bounds = array<i64: 2>, scalar_prefetch = 0 : i64, scratch_operands = 0 : i64, tpu.core_type = #tpu.core_type<tc>, window_params = [{transform_indices = @transform_0, window_bounds = array<i64: 1, 8, 256>}, {transform_indices = @transform_1, window_bounds = array<i64: 1, 8, 256>}, {transform_indices = @transform_2, window_bounds = array<i64: 2>}, {transform_indices = @transform_3, window_bounds = array<i64: 2>}, {pipeline_mode = #tpu.pipeline_mode<synchronous>, transform_indices = @transform_4, window_bounds = array<i64: 32, 8>}, {transform_indices = @transform_5, window_bounds = array<i64: 1, 32, 1>}, {pipeline_mode = #tpu.pipeline_mode<synchronous>, transform_indices = @transform_6, window_bounds = array<i64: 8, 32>}, {pipeline_mode = #tpu.pipeline_mode<synchronous>, transform_indices = @transform_7, window_bounds = array<i64: 8, 1>}, {transform_indices = @transform_8, window_bounds = array<i64: 1, 8, 256>}]} {
    %0 = arith.index_cast %arg0 : i32 to index
    %1 = memref.load %arg3[%0] : memref<2xf32, #tpu.memory_space<smem>>
    %2 = arith.index_cast %arg0 : i32 to index
    %3 = memref.load %arg4[%2] : memref<2xf32, #tpu.memory_space<smem>>
    %c0 = arith.constant 0 : index
    %c0_0 = arith.constant 0 : index
    %c0_1 = arith.constant 0 : index
    %4 = vector.load %arg1[%c0, %c0_0, %c0_1] : memref<1x8x256xbf16, #tpu.memory_space<vmem>>, vector<1x8x256xbf16>
    %5 = vector.shape_cast %4 : vector<1x8x256xbf16> to vector<8x256xbf16>
    %6 = arith.extf %5 : vector<8x256xbf16> to vector<8x256xf32>
    %7 = vector.broadcast %1 : f32 to vector<8x256xf32>
    %8 = arith.mulf %7, %6 : vector<8x256xf32>
    %c0_2 = arith.constant 0 : index
    %c0_3 = arith.constant 0 : index
    %c0_4 = arith.constant 0 : index
    %9 = vector.load %arg2[%c0_2, %c0_3, %c0_4] : memref<1x8x256xbf16, #tpu.memory_space<vmem>>, vector<1x8x256xbf16>
    %10 = vector.shape_cast %9 : vector<1x8x256xbf16> to vector<8x256xbf16>
    %11 = arith.extf %10 : vector<8x256xbf16> to vector<8x256xf32>
    %12 = vector.broadcast %3 : f32 to vector<8x256xf32>
    %13 = arith.mulf %12, %11 : vector<8x256xf32>
    %14 = arith.addf %8, %13 : vector<8x256xf32>
    %c0_5 = arith.constant 0 : index
    %c0_6 = arith.constant 0 : index
    %15 = vector.load %arg5[%c0_5, %c0_6] : memref<32x8xf32, #tpu.memory_space<vmem>>, vector<32x8xf32>
    %cst = arith.constant dense<0.000000e+00> : vector<32x256xf32>
    %16 = tpu.matmul %15, %14, %cst {dimension_numbers = #tpu.dot_dimension_numbers<[1], [0], [0], [1], [0, 0, 1, 1], [], []>} : vector<32x8xf32>, vector<8x256xf32>, vector<32x256xf32> -> vector<32x256xf32>
    %c0_7 = arith.constant 0 : index
    %c0_8 = arith.constant 0 : index
    %c0_9 = arith.constant 0 : index
    %17 = vector.load %arg6[%c0_7, %c0_8, %c0_9] : memref<1x32x1xf32, #tpu.memory_space<vmem>>, vector<1x32x1xf32>
    %18 = vector.shape_cast %17 : vector<1x32x1xf32> to vector<32x1xf32>
    %19 = vector.broadcast %18 : vector<32x1xf32> to vector<32x256xf32>
    %20 = arith.addf %16, %19 : vector<32x256xf32>
    %cst_10 = arith.constant 0.000000e+00 : f32
    %21 = vector.broadcast %cst_10 : f32 to vector<32x256xf32>
    %22 = arith.maximumf %20, %21 : vector<32x256xf32>
    %c0_11 = arith.constant 0 : index
    %c0_12 = arith.constant 0 : index
    %23 = vector.load %arg7[%c0_11, %c0_12] : memref<8x32xf32, #tpu.memory_space<vmem>>, vector<8x32xf32>
    %cst_13 = arith.constant dense<0.000000e+00> : vector<8x256xf32>
    %24 = tpu.matmul %23, %22, %cst_13 {dimension_numbers = #tpu.dot_dimension_numbers<[1], [0], [0], [1], [0, 0, 1, 1], [], []>} : vector<8x32xf32>, vector<32x256xf32>, vector<8x256xf32> -> vector<8x256xf32>
    %c0_14 = arith.constant 0 : index
    %c0_15 = arith.constant 0 : index
    %25 = vector.load %arg8[%c0_14, %c0_15] : memref<8x1xf32, #tpu.memory_space<vmem>>, vector<8x1xf32>
    %26 = vector.broadcast %25 : vector<8x1xf32> to vector<8x256xf32>
    %27 = arith.addf %24, %26 : vector<8x256xf32>
    %c0_16 = arith.constant 0 : index
    %c0_17 = arith.constant 0 : index
    %c0_18 = arith.constant 0 : index
    %28 = vector.load %arg9[%c0_16, %c0_17, %c0_18] : memref<1x8x256xf32, #tpu.memory_space<vmem>>, vector<1x8x256xf32>
    %29 = vector.shape_cast %28 : vector<1x8x256xf32> to vector<8x256xf32>
    %30 = vector.shape_cast %27 : vector<8x256xf32> to vector<1x8x256xf32>
    tpu.vector_store %arg9[%c0_16, %c0_17, %c0_18], %30 {strides = array<i32>} : memref<1x8x256xf32, #tpu.memory_space<vmem>>, vector<1x8x256xf32>,
    return
  }
  func.func @transform_0(%arg0: i32) -> (i32, i32, i32) {
    %c0_i32 = arith.constant 0 : i32
    %c0_i32_0 = arith.constant 0 : i32
    %c0_i32_1 = arith.constant 0 : i32
    return %arg0, %c0_i32, %c0_i32_0 : i32, i32, i32
  }
  func.func @transform_1(%arg0: i32) -> (i32, i32, i32) {
    %c0_i32 = arith.constant 0 : i32
    %c0_i32_0 = arith.constant 0 : i32
    %c0_i32_1 = arith.constant 0 : i32
    return %arg0, %c0_i32, %c0_i32_0 : i32, i32, i32
  }
  func.func @transform_2(%arg0: i32) -> i32 {
    %c0_i32 = arith.constant 0 : i32
    %c0_i32_0 = arith.constant 0 : i32
    return %c0_i32 : i32
  }
  func.func @transform_3(%arg0: i32) -> i32 {
    %c0_i32 = arith.constant 0 : i32
    %c0_i32_0 = arith.constant 0 : i32
    return %c0_i32 : i32
  }
  func.func @transform_4(%arg0: i32) -> (i32, i32) {
    %c0_i32 = arith.constant 0 : i32
    %c0_i32_0 = arith.constant 0 : i32
    %c0_i32_1 = arith.constant 0 : i32
    return %c0_i32, %c0_i32_0 : i32, i32
  }
  func.func @transform_5(%arg0: i32) -> (i32, i32, i32) {
    %c0_i32 = arith.constant 0 : i32
    %c0_i32_0 = arith.constant 0 : i32
    %c0_i32_1 = arith.constant 0 : i32
    return %arg0, %c0_i32, %c0_i32_0 : i32, i32, i32
  }
  func.func @transform_6(%arg0: i32) -> (i32, i32) {
    %c0_i32 = arith.constant 0 : i32
    %c0_i32_0 = arith.constant 0 : i32
    %c0_i32_1 = arith.constant 0 : i32
    return %c0_i32, %c0_i32_0 : i32, i32
  }
  func.func @transform_7(%arg0: i32) -> (i32, i32) {
    %c0_i32 = arith.constant 0 : i32
    %c0_i32_0 = arith.constant 0 : i32
    %c0_i32_1 = arith.constant 0 : i32
    return %c0_i32, %c0_i32_0 : i32, i32
  }
  func.func @transform_8(%arg0: i32) -> (i32, i32, i32) {
    %c0_i32 = arith.constant 0 : i32
    %c0_i32_0 = arith.constant 0 : i32
    %c0_i32_1 = arith.constant 0 : i32
    return %arg0, %c0_i32, %c0_i32_0 : i32, i32, i32
  }
}

</mosaic_0001>

<bundles_post_ra>
// kernel: diffusion_forward.21
= control target key start
LH: loop header
LB: loop body
LE: loop exit
PB: predicated region body
PF: predicated region fallthrough
CT: control target
= control target key end

     0   :  { %13 = vsyncpa [#allocation3], 0  ;;  %s877_s0 = inlined_call_operand.vmem [shape: bf16[2,8,256], index: 0, kind: input, shape index: {}]   ;;  %s878_s1 = inlined_call_operand.vmem [shape: bf16[2,8,256], index: 1, kind: input, shape index: {}]   ;;  %s879_s2 = inlined_call_operand.vmem [shape: f32[2], index: 2, kind: input, shape index: {}]   ;;  %s880_s3 = inlined_call_operand.vmem [shape: f32[2], index: 3, kind: input, shape index: {}]   ;;  %s881_s4 = inlined_call_operand.vmem [shape: f32[32,8], index: 4, kind: input, shape index: {}]   ;;  %s882_s5 = inlined_call_operand.vmem [shape: f32[2,32,1], index: 5, kind: input, shape index: {}]   ;;  %s883_s6 = inlined_call_operand.vmem [shape: f32[8,32], index: 6, kind: input, shape index: {}]   ;;  %s884_s7 = inlined_call_operand.vmem [shape: f32[8,1], index: 7, kind: input, shape index: {}]   ;;  %s885_s8 = inlined_call_operand.vmem [shape: f32[2,8,256], index: 8, kind: output, shape index: {}]  }
   0x1   :  { %14 = vsyncpa [#allocation5], 0  ;;  %s812_s27 = smov 0  }
   0x2 LB: > { %s650_s28 = sadd.s32 4294967295, %s762_s27   ;;  %p652_p0 = scmp.ge.s32.totalorder %s762_s27, 1  ;;  %s762_s27 = sphi %s812_s27, %s20_s27  }
   0x3   : > { %p234_p1 = scmp.lt.s32.totalorder %s762_s27, 3  ;;  %s246_s9 = sshll.u32 %s879_s2, 4  ;;  %s247_s9 = int_to_ptr.vmem [resolvable:$true] %s246_s9 }
   0x4   : > { %p700_p3 = scmp.eq.s32.totalorder %s650_s28, 0  ;;  %s256_s12 = sshll.u32 %s880_s3, 4  ;;  %s257_s12 = int_to_ptr.vmem [resolvable:$true] %s256_s12 }
   0x5   : > { %p235_p2 = pnand %p652_p0, %p234_p1  ;;  %s764_s13 = smov [#allocation2]  }
   0x6   : > { %s765_s14 = smov [#allocation4]  }
   0x7   : > { %p693_p4 = pneg %p235_p2 }
   0x8   : > { %302 = sbr.rel (%p235_p2) target bundleno = 319 (0x13f), region = 52 }
   0x9   : > { %p694_p5 = pnand %p700_p3, %p693_p4 }
   0xb   : > { %696 = dma.vmem_to_smem (!%p694_p5), %s247_s9, 16, %s764_s13, [#allocation3]  }
   0xc   : > { %699 = dma.vmem_to_smem (!%p694_p5), %s257_s12, 16, %s765_s14, [#allocation5]  }
   0xd   : > { %753 = dma.done.wait (%p700_p3), [#allocation3], 16  }
   0xe   : > { %755 = vsyncadd (%p700_p3), [#allocation3], 4294967280 }
   0xf   : > { %757 = dma.done.wait (%p700_p3), [#allocation5], 16  }
  0x10   : > { %759 = vsyncadd (%p700_p3), [#allocation5], 4294967280 }
  0x11   : > { %314 = sfence }
  0x12   : > { %p353_p6 = scmp.lt.s32.totalorder %s650_s28, 1  ;;  %s373_s15 = sld [smem:[#allocation2 + %s650_s28]]  ;;  %v766_v0 = vmov 0   ;;  %v389_v16 = vld [vmem:[%s881_s4] sm:$0xff]  ;;  %vm417_vm0 = vcmask 64512   ;;  %v392_v18 = vld [vmem:[%s881_s4 + $0x18] sm:$0xff] }
  0x13   : > { %s374_s16 = sld [smem:[#allocation4 + %s650_s28]]  ;;  %716 = vset.pattern.permute.xlu1 %v766_v0  ;;  %715 = vset.pattern.permute.xlu0 %v766_v0  ;;  %v390_v21 = vld [vmem:[%s881_s4 + $0x8] sm:$0xff]  ;;  %v391_v22 = vld [vmem:[%s881_s4 + $0x10] sm:$0xff]  ;;  %v497_v23 = vld [vmem:[%s884_s7] sm:$0xff]  ;;  %vm503_vm1 = vcmask 261120  }
  0x14   : > { %s887_s28 = smov (!%p353_p6, %s650_s28), 1  ;;  %717 = vset.pattern.permute.xlu2 %v766_v0  ;;  %v496_v51 = vld [vmem:[%s883_s6] sm:$0xff] }
  0x15   : > { %s679_s17 = sshll.u32 %s887_s28, 3  ;;  %s681_s18 = sshll.u32 %s887_s28, 5  ;;  %500 = vperm.xlu2 %717, %v497_v23  }
  0x16   : > { %s357_s21 = scalar_lea.vmem %s877_s0, %s679_s17  ;;  %s362_s24 = scalar_lea.vmem %s878_s1, %s679_s17 }
  0x17   : > { %v375_v1 = vld [vmem:[%s357_s21] sm:$0xff]  ;;  %s367_s29 = scalar_lea.vmem %s882_s5, %s681_s18  ;;  %s682_s20 = sshll.u32 %s887_s28, 4 }
  0x18   : > { %v378_v2 = vstv %s373_s15  ;;  %v381_v3 = vld [vmem:[%s362_s24] sm:$0xff]  ;;  %v376_v4 = vunpack.c.l.bf16 %v375_v1  ;;  %v377_v7 = vunpack.c.h.bf16 %v375_v1  ;;  %v394_v8 = vld [vmem:[%s367_s29 + $0x8] sm:$0xff]  ;;  %v396_v9 = vld [vmem:[%s367_s29 + $0x18] sm:$0xff]  ;;  %s372_s23 = scalar_lea.vmem %s885_s8, %s682_s20 }
  0x19   : > { %v382_v5 = vunpack.c.l.bf16 %v381_v3  ;;  %v384_v6 = vstv %s374_s16  ;;  %v383_v10 = vunpack.c.h.bf16 %v381_v3  ;;  %404 = vperm.xlu1 %716, %v394_v8   ;;  %414 = vperm.xlu0 %715, %v396_v9   ;;  %v393_v19 = vld [vmem:[%s367_s29] sm:$0xff]  ;;  %v395_v20 = vld [vmem:[%s367_s29 + $0x10] sm:$0xff] }
  0x1a   : > { %v379_v11 = vmul.f32 %v378_v2, %v376_v4  ;;  %v380_v13 = vmul.f32 %v378_v2, %v377_v7 }
  0x1b   : > { %v385_v12 = vmul.f32 %v384_v6, %v382_v5  ;;  %v386_v14 = vmul.f32 %v384_v6, %v383_v10 }
  0x1d   : > { %v387_v15 = vadd.f32 %v385_v12, %v379_v11  ;;  %v388_v17 = vadd.f32 %v386_v14, %v380_v13 }
  0x1f   : > { %445 = vmatpush.msra.mxu0 %v387_v15  ;;  %683 = vmatpush.msra.mxu2 %v387_v15 }
  0x20   : > { %474 = vmatpush.msra.mxu1 %v388_v17  ;;  %667 = vmatmul.msk.f32.vlgmr.msra.gmra.mxu0 %vm417_vm0, %v389_v16 }
  0x21   : > { %671 = vmatmul.msk.f32.vlgmr.msra.gmra.mxu1 %vm417_vm0, %v389_v16  ;;  %684 = vmatpush.msra.mxu3 %v388_v17 }
  0x22   : > { %670 = vmatmul.msk.f32.vlgmr.msra.gmra.mxu2 %vm417_vm0, %v392_v18  ;;  %674 = vmatmul.msk.f32.vlgmr.msra.gmra.mxu3 %vm417_vm0, %v392_v18 }
  0x23   : > { %399 = vperm.xlu1 %716, %v393_v19   ;;  %409 = vperm.xlu0 %715, %v395_v20  }
  0x28   : > { %668 = vmatmul.msk.f32.gmra.mxu0 %vm417_vm0, %v390_v21 }
  0x29   : > { %672 = vmatmul.msk.f32.gmra.mxu1 %vm417_vm0, %v390_v21 }
  0x30   : > { %669 = vmatmul.msk.f32.gmra.mxu0 %vm417_vm0, %v391_v22 }
  0x31   : > { %673 = vmatmul.msk.f32.gmra.mxu1 %vm417_vm0, %v391_v22 }
  0x6f   : > { %v501_v53 = vpop.permute.xlu2 %500 }
  0x8b   : > { %v405_v26 = vpop.permute.xlu1 %404  ;;  %v415_v27 = vpop.permute.xlu0 %414 }
  0x95   : > { %v400_v36 = vpop.permute.xlu1 %399  ;;  %v410_v37 = vpop.permute.xlu0 %409 }
  0x9d   : > { %v447_v24 = vpop.f32.mrf.mxu0 }
  0x9e   : > { %v476_v25 = vpop.f32.mrf.mxu1  ;;  %v448_v44 = vadd.f32 %v447_v24, %v400_v36 }
  0x9f   : > { %v477_v46 = vadd.f32 %v476_v25, %v400_v36 }
  0xa0   : > { %v488_v50 = vmax.f32 %v448_v44, 0.0 }
  0xa1   : > { %v489_v52 = vmax.f32 %v477_v46, 0.0 }
  0xa5   : > { %v450_v28 = vpop.f32.mrf.mxu0  ;;  %v456_v29 = vpop.f32.mrf.mxu2 }
  0xa6   : > { %v457_v30 = vadd.f32 %v456_v29, %v415_v27  ;;  %v479_v31 = vpop.f32.mrf.mxu1  ;;  %v485_v32 = vpop.f32.mrf.mxu3  ;;  %v451_v39 = vadd.f32 %v450_v28, %v405_v26 }
  0xa7   : > { %v486_v33 = vadd.f32 %v485_v32, %v415_v27  ;;  %v480_v42 = vadd.f32 %v479_v31, %v405_v26 }
  0xa8   : > { %v494_v34 = vmax.f32 %v457_v30, 0.0  ;;  %v490_v48 = vmax.f32 %v451_v39, 0.0 }
  0xa9   : > { %v495_v35 = vmax.f32 %v486_v33, 0.0  ;;  %v491_v49 = vmax.f32 %v480_v42, 0.0 }
  0xaa   : > { %519 = vmatpush.msrb.mxu2 %v494_v34 }
  0xab   : > { %539 = vmatpush.msrb.mxu3 %v495_v35 }
  0xad   : > { %v453_v38 = vpop.f32.mrf.mxu0 }
  0xae   : > { %v454_v40 = vadd.f32 %v453_v38, %v410_v37  ;;  %v482_v41 = vpop.f32.mrf.mxu1 }
  0xaf   : > { %v483_v43 = vadd.f32 %v482_v41, %v410_v37 }
  0xb0   : > { %v492_v45 = vmax.f32 %v454_v40, 0.0 }
  0xb1   : > { %v493_v47 = vmax.f32 %v483_v43, 0.0 }
  0xb2   : > { %520 = vmatpush.msrb.mxu2 %v492_v45 }
  0xb3   : > { %540 = vmatpush.msrb.mxu3 %v493_v47 }
  0xb4   : > { %521 = vmatpush.msrb.mxu2 %v490_v48 }
  0xb5   : > { %541 = vmatpush.msrb.mxu3 %v491_v49 }
  0xb6   : > { %522 = vmatpush.msrb.mxu2 %v488_v50 }
  0xb7   : > { %542 = vmatpush.msrb.mxu3 %v489_v52  ;;  %675 = vmatmul.msk.f32.vlgmr.msrb.gmra.mxu2 %vm503_vm1, %v496_v51 }
  0xb8   : > { %676 = vmatmul.msk.f32.vlgmr.msrb.gmra.mxu3 %vm503_vm1, %v496_v51 }
 0x13a   : > { %v524_v54 = vpop.f32.mrf.mxu2 }
 0x13b   : > { %v525_v55 = vadd.f32 %v524_v54, %v501_v53  ;;  %v544_v56 = vpop.f32.mrf.mxu3 }
 0x13c   : > { %v545_v57 = vadd.f32 %v544_v56, %v501_v53 }
 0x13d   : > { %547 = vst [vmem:[%s372_s23] sm:$0xff] %v525_v55 }
 0x13e   : > { %548 = vst [vmem:[%s372_s23 + $0x8] sm:$0xff] %v545_v57 }
 0x13f PF: > { %s20_s27 = sadd.s32 1, %s762_s27  }
 0x140   : > { %p17_p7 = scmp.ge.s32.totalorder %s20_s27, 4  }
 0x142   :  { %19 = sbr.rel (!%p17_p7) target bundleno = 2 (0x2), region = 97 }
 0x147   :  { %570 = vsyncpa [#allocation3], 1 }
 0x148   :  { %572 = vsyncpa [#allocation3 + $0x1], 1 }
 0x149   :  { %573 = vsyncpa [#allocation5], 1 }

</bundles_post_ra>
